<compile_context>
chip_gen: v7x
topology: tpu7x:2x2x1
jax: 0.10.0
libtpu: 0.0.40
codegen_flags: <defaults>
</compile_context>

<pallas_src>
import functools

import jax
import jax.numpy as jnp
from jax import lax
from jax.experimental import pallas as pl
from jax.experimental.pallas import tpu as pltpu

K4 = 4      # conv kernel size
STRIDE = 2
PAD = 1
BN_EPS = 1e-5
LANE = 128


def _round_up(x, m):
    return ((x + m - 1) // m) * m


# ----------------------------------------------------------------------------
# Pallas kernels: tiled matmul with fused bias + activation epilogue, bf16 out
# ----------------------------------------------------------------------------
def _apply_act(acc, post_act):
    if post_act == "relu":
        return jnp.maximum(acc, 0.0)
    if post_act == "leaky":
        return jnp.where(acc >= 0, acc, 0.2 * acc)
    if post_act == "tanh":
        return jnp.tanh(acc)
    return acc


def _mm_kernel_single(a_ref, b_ref, bias_ref, o_ref, *, post_act):
    # K fully resident (nk == 1): no accumulator scratch, single fused pass.
    acc = jnp.dot(a_ref[...], b_ref[...], preferred_element_type=jnp.float32)
    acc = acc + bias_ref[...]
    o_ref[...] = _apply_act(acc, post_act).astype(o_ref.dtype)


def _mm_kernel_multi(a_ref, b_ref, bias_ref, o_ref, acc_ref, *, post_act):
    @pl.when(pl.program_id(3) == 0)
    def _():
        acc_ref[...] = jnp.zeros_like(acc_ref)

    acc_ref[...] += jnp.dot(a_ref[...], b_ref[...], preferred_element_type=jnp.float32)

    @pl.when(pl.program_id(3) == pl.num_programs(3) - 1)
    def _():
        acc = acc_ref[...] + bias_ref[...]
        o_ref[...] = _apply_act(acc, post_act).astype(o_ref.dtype)


def conv_matmul(patches, w_mat, bias2, post_act="none", out_dtype=jnp.bfloat16):
    """Batched fused matmul: out[p] = act(patches[p] @ w_mat[p] + bias2[p]).

    patches: (P, M, K) bf16, w_mat: (P, K, Np) bf16 with Np % 128 == 0,
    bias2: (P, 1, Np) f32.  Returns (P, M, Np) in out_dtype (bf16 default).
    """
    P, M, K = patches.shape
    Pw, Kw, Np = w_mat.shape
    assert P == Pw and K == Kw and Np % LANE == 0
    assert bias2.shape == (P, 1, Np)

    # --- M tiling (big tiles amortize ~0.35us per grid step; pad only if needed)
    if M >= 2048:
        tm = 1024
    elif M >= 512:
        tm = 512
    else:
        tm = _round_up(max(M, 1), 16)
    Mp = _round_up(M, tm)
    if Mp != M:
        patches = jnp.pad(patches, ((0, 0), (0, Mp - M), (0, 0)))

    # --- N tiling (lane-dense; Np already a multiple of 128)
    if Np <= 512:
        tn = Np
    elif Np % 256 == 0:
        tn = 256
    else:
        tn = 128
    # v7x megacore: ensure >= 2 parallel tiles when there is only one (P, M) tile.
    if P * (Mp // tm) == 1 and tn == Np and Np % 256 == 0:
        tn = Np // 2

    # --- K tiling: keep whole K resident when it fits, else 1024/512/256/128 chunks
    if K <= 1024:
        tk, nk = K, 1
    else:
        tk = K
        for cand in (1024, 512, 256, 128):
            if K % cand == 0:
                tk = cand
                break
        nk = K // tk

    # --- explicit VMEM budget (double-buffered bf16 A/B/out tiles, f32 acc, headroom).
    #     Kept modest (<= 40 MiB) so XLA's scoped VMEM isn't squeezed on v7x (64 MiB physical).
    est = 2 * (tm * tk * 2 + tk * tn * 2 + tn * 4 + tm * tn * 2)
    if nk > 1:
        est += tm * tn * 4
    vmem_limit = int(min(max(int(1.5 * est) + (6 << 20), 16 << 20), 40 << 20))

    out_shape = jax.ShapeDtypeStruct((P, Mp, Np), out_dtype)
    if nk == 1:
        out = pl.pallas_call(
            functools.partial(_mm_kernel_single, post_act=post_act),
            out_shape=out_shape,
            grid=(P, Mp // tm, Np // tn),
            in_specs=[
                pl.BlockSpec((None, tm, tk), lambda p, m, n: (p, m, 0)),
                pl.BlockSpec((None, tk, tn), lambda p, m, n: (p, 0, n)),
                pl.BlockSpec((None, 1, tn), lambda p, m, n: (p, 0, n)),
            ],
            out_specs=pl.BlockSpec((None, tm, tn), lambda p, m, n: (p, m, n)),
            compiler_params=pltpu.CompilerParams(
                dimension_semantics=("parallel", "parallel", "parallel"),
                vmem_limit_bytes=vmem_limit),
        )(patches, w_mat, bias2)
    else:
        out = pl.pallas_call(
            functools.partial(_mm_kernel_multi, post_act=post_act),
            out_shape=out_shape,
            grid=(P, Mp // tm, Np // tn, nk),
            in_specs=[
                pl.BlockSpec((None, tm, tk), lambda p, m, n, k: (p, m, k)),
                pl.BlockSpec((None, tk, tn), lambda p, m, n, k: (p, k, n)),
                pl.BlockSpec((None, 1, tn), lambda p, m, n, k: (p, 0, n)),
            ],
            out_specs=pl.BlockSpec((None, tm, tn), lambda p, m, n, k: (p, m, n)),
            scratch_shapes=[pltpu.VMEM((tm, tn), jnp.float32)],
            compiler_params=pltpu.CompilerParams(
                dimension_semantics=("parallel", "parallel", "parallel", "arbitrary"),
                vmem_limit_bytes=vmem_limit),
        )(patches, w_mat, bias2)
    return out[:, :M] if Mp != M else out


# ----------------------------------------------------------------------------
# im2col glue (plain JAX, bf16)
# ----------------------------------------------------------------------------
def im2col_down(x):
    """Conv2d(k=4,s=2,p=1).  x: (N,H,W,C) bf16 -> ((N*OH*OW, 16*C), (N,OH,OW)).
    Column order (kh, kw, ci)."""
    N, H, W, C = x.shape
    OH = (H + 2 * PAD - K4) // STRIDE + 1
    OW = (W + 2 * PAD - K4) // STRIDE + 1
    xp = jnp.pad(x, ((0, 0), (PAD, PAD), (PAD, PAD), (0, 0)))
    cols = []
    for kh in range(K4):
        for kw in range(K4):
            cols.append(xp[:, kh:kh + STRIDE * OH:STRIDE, kw:kw + STRIDE * OW:STRIDE, :])
    patches = jnp.concatenate(cols, axis=-1)
    return patches.reshape(N * OH * OW, K4 * K4 * C), (N, OH, OW)


def im2col_up_all(x):
    """ConvTranspose2d(k=4,s=2,p=1) as 4 output-parity stride-1 2x2 convs.
    x: (N,H,W,C) bf16 -> (4, N*H*W, 4*C); parity p = 2*ph + pw; column order (dh, dw, ci)."""
    N, H, W, C = x.shape
    xp = jnp.pad(x, ((0, 0), (1, 1), (1, 1), (0, 0)))
    mats = []
    for ph in range(2):
        for pw in range(2):
            cols = []
            for dh in range(2):
                for dw in range(2):
                    cols.append(xp[:, ph + dh:ph + dh + H, pw + dw:pw + dw + W, :])
            mats.append(jnp.concatenate(cols, axis=-1).reshape(N * H * W, 4 * C))
    return jnp.stack(mats, axis=0)


# ----------------------------------------------------------------------------
# One-time weight preprocessing (layout, parity taps, BN fold, lane pad, bf16)
# ----------------------------------------------------------------------------
def down_weight_to_mat(w):
    """Conv2d weight (Cout, Cin, 4, 4) -> (16*Cin, Cout), rows ordered (kh, kw, ci)."""
    cout = w.shape[0]
    return jnp.transpose(w, (2, 3, 1, 0)).reshape(-1, cout)


def up_weight_parity_mat(w, ph, pw):
    """ConvTranspose2d weight (Cin, Cout, 4, 4) -> (4*Cin, Cout) for output parity (ph, pw).
    Rows ordered (dh, dw, ci); kernel tap (kh, kw) = (3-2*dh-ph, 3-2*dw-pw)."""
    cout = w.shape[1]
    taps = []
    for dh in range(2):
        for dw in range(2):
            taps.append(w[:, :, 3 - 2 * dh - ph, 3 - 2 * dw - pw])  # (Cin, Cout)
    return jnp.stack(taps, axis=0).reshape(-1, cout)


def fold_bn(w_mat, bn):
    """Fold eval-mode BatchNorm affine into the matmul weight / bias."""
    gamma, beta, mean, var = bn
    scale = gamma / jnp.sqrt(var + BN_EPS)
    return w_mat * scale[None, :], beta - mean * scale


def pack_wb(w_mats, biases):
    """Stack per-parity (K, nc) weights / (nc,) biases; pad nc to a lane-dense multiple of
    128; bf16 weights, f32 bias.  Returns dict(w: (P,K,Np) bf16, b: (P,1,Np) f32, nc)."""
    nc = w_mats[0].shape[1]
    np_ = _round_up(nc, LANE)
    w = jnp.stack([jnp.pad(m, ((0, 0), (0, np_ - nc))) for m in w_mats]).astype(jnp.bfloat16)
    b = jnp.stack([jnp.pad(v, (0, np_ - nc)).reshape(1, np_) for v in biases]).astype(jnp.float32)
    return {"w": w, "b": b, "nc": nc}


def prepare_block(p):
    kind = p["kind"]
    q = {"kind": kind}

    # down conv (Conv2d, bias=False) + BN (mid blocks only), next activation fused
    w_mat = down_weight_to_mat(p["down_w"])
    nc = w_mat.shape[1]
    if kind == "mid":
        w_mat, bias = fold_bn(w_mat, p["down_bn"])
    else:
        bias = jnp.zeros((nc,), jnp.float32)
    q["down"] = pack_wb([w_mat], [bias])
    # Innermost down output is only consumed by ReLU -> fuse ReLU.  Other down outputs feed
    # the child's LeakyReLU and a later skip-ReLU; relu(leaky_relu(x)) == relu(x), so fusing
    # LeakyReLU is exact and the skip-ReLU is applied in glue.
    q["down_act"] = "relu" if kind == "inner" else "leaky"

    # up conv (ConvTranspose2d) -> 4 parity matrices (one stacked call); BN or bias folded;
    # the parent's uprelu (or the final Tanh) fused into the epilogue.
    wms, bs = [], []
    for ph in range(2):
        for pw in range(2):
            wm = up_weight_parity_mat(p["up_w"], ph, pw)
            if kind == "outer":
                b = p["up_b"].astype(jnp.float32)
            else:
                wm, b = fold_bn(wm, p["up_bn"])
            wms.append(wm)
            bs.append(b)
    q["up"] = pack_wb(wms, bs)
    q["up_act"] = "tanh" if kind == "outer" else "relu"

    q["sub"] = prepare_block(p["sub"]) if p["sub"] is not None else None
    return q


def prepare_unet(raw_params):
    return prepare_block(raw_params)


# ----------------------------------------------------------------------------
# Parameter initialization (deterministic, shapes match the PyTorch __init__)
# ----------------------------------------------------------------------------
def _init_bn(key, c):
    k1, k2, k3, k4 = jax.random.split(key, 4)
    gamma = 1.0 + 0.1 * jax.random.normal(k1, (c,), jnp.float32)
    beta = 0.1 * jax.random.normal(k2, (c,), jnp.float32)
    mean = 0.1 * jax.random.normal(k3, (c,), jnp.float32)
    var = 1.0 + 0.1 * jax.random.uniform(k4, (c,), jnp.float32)
    return (gamma, beta, mean, var)


def init_block(key, nf, ni, submodule=None, input_c=None, dropout=False,
               innermost=False, outermost=False):
    if input_c is None:
        input_c = nf
    ks = jax.random.split(key, 6)
    p = {"kind": "outer" if outermost else ("inner" if innermost else "mid"),
         "sub": submodule, "dropout": dropout}
    # downconv: Conv2d(input_c, ni, 4, 2, 1, bias=False) -> weight (ni, input_c, 4, 4)
    p["down_w"] = 0.05 * jax.random.normal(ks[0], (ni, input_c, K4, K4), jnp.float32)
    if p["kind"] == "mid":
        p["down_bn"] = _init_bn(ks[1], ni)
    # upconv: ConvTranspose2d(in, nf, 4, 2, 1) -> weight (in, nf, 4, 4)
    up_in = ni if innermost else 2 * ni
    p["up_w"] = 0.05 * jax.random.normal(ks[2], (up_in, nf, K4, K4), jnp.float32)
    if outermost:
        p["up_b"] = 0.05 * jax.random.normal(ks[3], (nf,), jnp.float32)  # bias=True here
    else:
        p["up_bn"] = _init_bn(ks[4], nf)
    return p


def init_unet(key, input_c=1, output_c=2, n_down=8, num_filters=64):
    keys = iter(jax.random.split(key, n_down + 2))
    block = init_block(next(keys), num_filters * 8, num_filters * 8, innermost=True)
    for _ in range(n_down - 5):
        block = init_block(next(keys), num_filters * 8, num_filters * 8,
                           submodule=block, dropout=True)
    out_filters = num_filters * 8
    for _ in range(3):
        block = init_block(next(keys), out_filters // 2, out_filters, submodule=block)
        out_filters //= 2
    return init_block(next(keys), output_c, out_filters, input_c=input_c,
                      submodule=block, outermost=True)


# ----------------------------------------------------------------------------
# Forward pass (recursive U-Net blocks); hot path runs in the Pallas matmul kernel
# ----------------------------------------------------------------------------
def block_forward(q, x_act):
    """x_act: (N,H,W,C) bf16, already activated for this block's down conv
    (LeakyReLU fused into the producer's epilogue; raw input for the outermost block)."""
    kind = q["kind"]

    # ---- down: Conv2d(4,2,1) [+ folded BN] with the following activation fused
    patches, (n, oh, ow) = im2col_down(x_act)
    d = q["down"]
    y = conv_matmul(patches[None], d["w"], d["b"], post_act=q["down_act"])
    y = y[0, :, :d["nc"]].reshape(n, oh, ow, d["nc"])

    # ---- submodule (its return is already ReLU'd, ready for this block's up conv)
    z = block_forward(q["sub"], y) if q["sub"] is not None else y

    # ---- up: ConvTranspose2d(4,2,1) as 4 batched parity convs (one pallas_call);
    #      folded BN + fused ReLU, or bias + fused Tanh for the outermost block.
    nb, h, w, _ = z.shape
    u = q["up"]
    pat = im2col_up_all(z)                                      # (4, M, 4*C) bf16
    o = conv_matmul(pat, u["w"], u["b"], post_act=q["up_act"])  # (4, M, Np) bf16
    o = o[:, :, :u["nc"]].reshape(2, 2, nb, h, w, u["nc"])
    o = jnp.transpose(o, (2, 3, 0, 4, 1, 5)).reshape(nb, 2 * h, 2 * w, u["nc"])
    # TODO(synk): nn.Dropout(0.5) on dropout=True blocks is identity here (eval mode).

    if kind == "outer":
        return o                                                # Tanh output (bf16)
    # skip connection: ReLU only on the skip half; the up half is already ReLU'd in-kernel.
    # relu(leaky_relu(x)) == relu(x) makes the fused LeakyReLU on x_act exactly recoverable.
    return jnp.concatenate([jnp.maximum(x_act, 0), o], axis=-1)


def unet_forward(params, x_nchw):
    x = jnp.transpose(x_nchw, (0, 2, 3, 1)).astype(jnp.bfloat16)   # NCHW -> NHWC bf16
    y = block_forward(params, x)
    return jnp.transpose(y, (0, 3, 1, 2)).astype(jnp.float32)      # NHWC -> NCHW f32


# ----------------------------------------------------------------------------
# Plain-JAX f32 reference (mirrors the PyTorch module exactly, eval mode)
# ----------------------------------------------------------------------------
def _bn_ref(x, bn):
    gamma, beta, mean, var = bn
    return (x - mean) * (gamma / jnp.sqrt(var + BN_EPS)) + beta


def _conv_down_ref(x, w):
    return lax.conv_general_dilated(
        x, jnp.transpose(w, (2, 3, 1, 0)), window_strides=(STRIDE, STRIDE),
        padding=((PAD, PAD), (PAD, PAD)),
        dimension_numbers=("NHWC", "HWIO", "NHWC"))


def _conv_up_ref(x, w):
    # ConvTranspose2d(4,2,1) == stride-1 conv with lhs_dilation=2, pad k-1-p, flipped kernel.
    w_hwio = jnp.transpose(w[:, :, ::-1, ::-1], (2, 3, 0, 1))
    e = K4 - 1 - PAD
    return lax.conv_general_dilated(
        x, w_hwio, window_strides=(1, 1), padding=((e, e), (e, e)),
        lhs_dilation=(STRIDE, STRIDE),
        dimension_numbers=("NHWC", "HWIO", "NHWC"))


def block_forward_ref(p, x):
    kind = p["kind"]
    xa = x if kind == "outer" else jnp.where(x >= 0, x, 0.2 * x)
    y = _conv_down_ref(xa, p["down_w"])
    if kind == "mid":
        y = _bn_ref(y, p["down_bn"])
    if p["sub"] is not None:
        y = block_forward_ref(p["sub"], y)
    ya = jnp.maximum(y, 0.0)
    u = _conv_up_ref(ya, p["up_w"])
    if kind == "outer":
        return jnp.tanh(u + p["up_b"])
    u = _bn_ref(u, p["up_bn"])
    return jnp.concatenate([x, u], axis=-1)


def unet_forward_ref(raw_params, x_nchw):
    x = jnp.transpose(x_nchw, (0, 2, 3, 1)).astype(jnp.float32)
    y = block_forward_ref(raw_params, x)
    return jnp.transpose(y, (0, 3, 1, 2))


# ----------------------------------------------------------------------------
if __name__ == "__main__":
    key = jax.random.PRNGKey(0)
    pkey, xkey, mk1, mk2, mk3 = jax.random.split(key, 5)

    # --- unit check of the multi-K (nk > 1) kernel path, not exercised by the small U-Net.
    a = (0.5 * jax.random.normal(mk1, (1, 64, 2048), jnp.float32)).astype(jnp.bfloat16)
    b = (0.05 * jax.random.normal(mk2, (1, 2048, 128), jnp.float32)).astype(jnp.bfloat16)
    c = jax.random.normal(mk3, (1, 1, 128), jnp.float32)
    got = jax.block_until_ready(conv_matmul(a, b, c, post_act="relu")).astype(jnp.float32)
    want = jnp.maximum(
        jnp.einsum("pmk,pkn->pmn", a.astype(jnp.float32), b.astype(jnp.float32)) + c, 0.0)
    assert got.shape == want.shape, (got.shape, want.shape)
    assert float(jnp.max(jnp.abs(got - want))) < 0.1

    # --- full U-Net forward: small config consistent with the module (n_down=5 levels,
    #     num_filters=4), 32x32 input reaches 1x1 at the innermost block.
    N_DOWN, NUM_FILTERS = 5, 4
    raw = init_unet(pkey, input_c=1, output_c=2, n_down=N_DOWN, num_filters=NUM_FILTERS)
    params = prepare_unet(raw)   # folded / padded / bf16 matmul-ready weights, once

    x = jax.random.normal(xkey, (2, 1, 32, 32), jnp.float32)  # NCHW, like PyTorch
    fwd = jax.jit(functools.partial(unet_forward, params))
    y = jax.block_until_ready(fwd(x))

    assert y.shape == (2, 2, 32, 32), y.shape
    assert bool(jnp.all(jnp.isfinite(y)))
    assert bool(jnp.all(jnp.abs(y) <= 1.0 + 1e-3))            # final Tanh range

    # numerical check vs. the plain-JAX f32 reference (bf16 path -> loose-but-bug-catching tol)
    y_ref = unet_forward_ref(raw, x)
    err = float(jnp.max(jnp.abs(y - y_ref)))
    assert err < 0.1, err

    print("KERNEL_OK")
</pallas_src>

<mosaic_0001>
module attributes {stable_mosaic.version = 11 : i64} {
  func.func @_mm_kernel_multi(%arg0: i32, %arg1: i32, %arg2: i32, %arg3: i32, %arg4: memref<1x64x1024xbf16, #tpu.memory_space<vmem>>, %arg5: memref<1x1024x128xbf16, #tpu.memory_space<vmem>>, %arg6: memref<1x1x128xf32, #tpu.memory_space<vmem>>, %arg7: memref<1x64x128xbf16, #tpu.memory_space<vmem>>, %arg8: memref<64x128xf32, #tpu.memory_space<vmem>>) attributes {dimension_semantics = [#tpu.dimension_semantics<parallel>, #tpu.dimension_semantics<parallel>, #tpu.dimension_semantics<parallel>, #tpu.dimension_semantics<arbitrary>], iteration_bounds = array<i64: 1, 1, 1, 2>, scalar_prefetch = 0 : i64, scratch_operands = 1 : i64, tpu.core_type = #tpu.core_type<tc>, window_params = [{transform_indices = @transform_0, window_bounds = array<i64: 1, 64, 1024>}, {transform_indices = @transform_1, window_bounds = array<i64: 1, 1024, 128>}, {transform_indices = @transform_2, window_bounds = array<i64: 1, 1, 128>}, {transform_indices = @transform_3, window_bounds = array<i64: 1, 64, 128>}]} {
    %c0_i32 = arith.constant 0 : i32
    %0 = arith.cmpi eq, %arg3, %c0_i32 : i32
    %1 = arith.extui %0 : i1 to i32
    %c0_i32_0 = arith.constant 0 : i32
    %2 = arith.cmpi ne, %1, %c0_i32_0 : i32
    scf.if %2 {
      %cst_11 = arith.constant 0.000000e+00 : f32
      %14 = vector.broadcast %cst_11 : f32 to vector<64x128xf32>
      %c0_12 = arith.constant 0 : index
      %c0_13 = arith.constant 0 : index
      %15 = vector.load %arg8[%c0_12, %c0_13] : memref<64x128xf32, #tpu.memory_space<vmem>>, vector<64x128xf32>
      tpu.vector_store %arg8[%c0_12, %c0_13], %14 {strides = array<i32>} : memref<64x128xf32, #tpu.memory_space<vmem>>, vector<64x128xf32>,
    } else {
    }
    %c0 = arith.constant 0 : index
    %c0_1 = arith.constant 0 : index
    %3 = vector.load %arg8[%c0, %c0_1] : memref<64x128xf32, #tpu.memory_space<vmem>>, vector<64x128xf32>
    %c0_2 = arith.constant 0 : index
    %c0_3 = arith.constant 0 : index
    %c0_4 = arith.constant 0 : index
    %4 = vector.load %arg4[%c0_2, %c0_3, %c0_4] : memref<1x64x1024xbf16, #tpu.memory_space<vmem>>, vector<1x64x1024xbf16>
    %5 = vector.shape_cast %4 : vector<1x64x1024xbf16> to vector<64x1024xbf16>
    %c0_5 = arith.constant 0 : index
    %c0_6 = arith.constant 0 : index
    %c0_7 = arith.constant 0 : index
    %6 = vector.load %arg5[%c0_5, %c0_6, %c0_7] : memref<1x1024x128xbf16, #tpu.memory_space<vmem>>, vector<1x1024x128xbf16>
    %7 = vector.shape_cast %6 : vector<1x1024x128xbf16> to vector<1024x128xbf16>
    %cst = arith.constant dense<0.000000e+00> : vector<64x128xf32>
    %8 = tpu.matmul %5, %7, %cst {dimension_numbers = #tpu.dot_dimension_numbers<[1], [0], [0], [1], [0, 0, 1, 1], [], []>} : vector<64x1024xbf16>, vector<1024x128xbf16>, vector<64x128xf32> -> vector<64x128xf32>
    %9 = arith.addf %3, %8 : vector<64x128xf32>
    %c0_8 = arith.constant 0 : index
    %c0_9 = arith.constant 0 : index
    %10 = vector.load %arg8[%c0_8, %c0_9] : memref<64x128xf32, #tpu.memory_space<vmem>>, vector<64x128xf32>
    tpu.vector_store %arg8[%c0_8, %c0_9], %9 {strides = array<i32>} : memref<64x128xf32, #tpu.memory_space<vmem>>, vector<64x128xf32>,
    %c1_i32 = arith.constant 1 : i32
    %11 = arith.cmpi eq, %arg3, %c1_i32 : i32
    %12 = arith.extui %11 : i1 to i32
    %c0_i32_10 = arith.constant 0 : i32
    %13 = arith.cmpi ne, %12, %c0_i32_10 : i32
    scf.if %13 {
      %c0_11 = arith.constant 0 : index
      %c0_12 = arith.constant 0 : index
      %14 = vector.load %arg8[%c0_11, %c0_12] : memref<64x128xf32, #tpu.memory_space<vmem>>, vector<64x128xf32>
      %c0_13 = arith.constant 0 : index
      %c0_14 = arith.constant 0 : index
      %c0_15 = arith.constant 0 : index
      %15 = vector.load %arg6[%c0_13, %c0_14, %c0_15] : memref<1x1x128xf32, #tpu.memory_space<vmem>>, vector<1x1x128xf32>
      %16 = vector.shape_cast %15 : vector<1x1x128xf32> to vector<1x128xf32>
      %17 = vector.broadcast %16 : vector<1x128xf32> to vector<64x128xf32>
      %18 = arith.addf %14, %17 : vector<64x128xf32>
      %cst_16 = arith.constant 0.000000e+00 : f32
      %19 = vector.broadcast %cst_16 : f32 to vector<64x128xf32>
      %20 = arith.maximumf %18, %19 : vector<64x128xf32>
      %21 = arith.truncf %20 : vector<64x128xf32> to vector<64x128xbf16>
      %c0_17 = arith.constant 0 : index
      %c0_18 = arith.constant 0 : index
      %c0_19 = arith.constant 0 : index
      %22 = vector.load %arg7[%c0_17, %c0_18, %c0_19] : memref<1x64x128xbf16, #tpu.memory_space<vmem>>, vector<1x64x128xbf16>
      %23 = vector.shape_cast %22 : vector<1x64x128xbf16> to vector<64x128xbf16>
      %24 = vector.shape_cast %21 : vector<64x128xbf16> to vector<1x64x128xbf16>
      tpu.vector_store %arg7[%c0_17, %c0_18, %c0_19], %24 {strides = array<i32>} : memref<1x64x128xbf16, #tpu.memory_space<vmem>>, vector<1x64x128xbf16>,
    } else {
    }
    return
  }
  func.func @transform_0(%arg0: i32, %arg1: i32, %arg2: i32, %arg3: i32) -> (i32, i32, i32) {
    %c0_i32 = arith.constant 0 : i32
    return %arg0, %arg1, %arg3 : i32, i32, i32
  }
  func.func @transform_1(%arg0: i32, %arg1: i32, %arg2: i32, %arg3: i32) -> (i32, i32, i32) {
    %c0_i32 = arith.constant 0 : i32
    return %arg0, %arg3, %arg2 : i32, i32, i32
  }
  func.func @transform_2(%arg0: i32, %arg1: i32, %arg2: i32, %arg3: i32) -> (i32, i32, i32) {
    %c0_i32 = arith.constant 0 : i32
    %c0_i32_0 = arith.constant 0 : i32
    return %arg0, %c0_i32, %arg2 : i32, i32, i32
  }
  func.func @transform_3(%arg0: i32, %arg1: i32, %arg2: i32, %arg3: i32) -> (i32, i32, i32) {
    %c0_i32 = arith.constant 0 : i32
    return %arg0, %arg1, %arg2 : i32, i32, i32
  }
}

</mosaic_0001>

<bundles_post_ra>
// kernel: tpu_custom_call.1
= control target key start
LH: loop header
LB: loop body
LE: loop exit
PB: predicated region body
PF: predicated region fallthrough
CT: control target
= control target key end

     0   :  { %8 = vsyncpa [#allocation4], 0  ;;  %s2458_s0 = inlined_call_operand.hbm [shape: bf16[1,64,2048], index: 0, kind: input, shape index: {}]   ;;  %s2459_s1 = inlined_call_operand.hbm [shape: bf16[1,2048,128], index: 1, kind: input, shape index: {}]   ;;  %s2460_s2 = inlined_call_operand.vmem [shape: f32[1,1,128], index: 2, kind: input, shape index: {}]   ;;  %s2461_s3 = inlined_call_operand.hbm [shape: bf16[1,64,128], index: 3, kind: output, shape index: {}]  }
   0x1   :  { %10 = vsyncpa [#allocation4 + $0x1], 0 }
   0x2   :  { %11 = vsyncpa [#allocation7], 0 }
   0x3   :  { %13 = vsyncpa [#allocation7 + $0x1], 0 }
   0x4   :  { %14 = vsyncpa [#allocation5], 0  ;;  %s2139_s12 = smov 0   ;;  %s2141_s13 = smov 0  }
   0x5   :  { %s2143_s14 = smov 0   ;;  %s2145_s15 = smov 0  }
   0x6   :  { %s2147_s16 = smov 0   ;;  %s2149_s17 = smov 0  }
   0x7 LB: > { %s1506_s18 = sadd.s32 4294967295, %s2106_s17   ;;  %s35_s19 = sadd.s32 1, %s2102_s16  ;;  %s2106_s17 = sphi %s2149_s17, %s20_s17   ;;  %s2102_s16 = sphi %s2147_s16, %s2474_s16   ;;  %s2098_s15 = sphi %s2145_s15, %s2473_s15   ;;  %s2094_s14 = sphi %s2143_s14, %s2472_s14   ;;  %s2090_s13 = sphi %s2141_s13, %s2471_s13   ;;  %s2086_s12 = sphi %s2139_s12, %s2470_s12  }
   0x8   : > { %p36_p0 = scmp.ge.s32.totalorder %s35_s19, 2  ;;  %s57_s20 = sadd.s32 1, %s2094_s14 }
   0x9   : > { %p64_p1 = scmp.ne.s32.totalorder %s2094_s14, %s2090_s13  ;;  %p65_p2 = scmp.eq.s32.totalorder %s2106_s17, 0 }
   0xa   : > { %s2476_s19 = smov (%p36_p0, %s35_s19), 0  ;;  %p70_p4 = scmp.ne.s32.totalorder %s2090_s13, %s2086_s12 }
   0xb   : > { %p2175_p3 = por %p65_p2, %p64_p1  ;;  %s53_s22 = ssub.s32 %s2102_s16, %s2476_s19 }
   0xc   : > { %p71_p5 = scmp.eq.s32.totalorder %s1506_s18, 0  ;;  %p55_p6 = scmp.eq.s32.totalorder %s53_s22, 0 }
   0xd   : > { %p1838_p8 = scmp.lt.s32.totalorder %s2106_s17, 2  ;;  %s2193_s25 = sand.u32 1, %s2094_s14  }
   0xe   : > { %p2184_p7 = por %p71_p5, %p70_p4  ;;  %s1630_s26 = sshll.u32 %s2102_s16, 9 }
   0xf   : > { %s2190_s24 = scalar_select %p55_p6, %s2094_s14, %s57_s20  }
  0x10   : > { %s2464_s23 = scalar_select %p2184_p7, 1, 0 }
  0x11   : > { %s1510_s27 = sshll.u32 %s2193_s25, 8  ;;  %s2200_s30 = scalar_lea.hbm %s2458_s0, %s1630_s26 }
  0x12   : > { %s195_s4 = scalar_lea.vmem [#allocation3], %s1510_s27  ;;  %p2204_p9 = pnand %p1838_p8, %p2175_p3 }
  0x13   : > { %s207_s5 = sshll.u32 %s195_s4, 4  ;;  %s192_s7 = scalar_lea.sflag [#allocation4], %s2193_s25  ;;  %s2208_s5 = int_to_ptr.vmem [resolvable:$true] %s207_s5 }
  0x14   : > { %s1962_s8 = scalar_lea.hbm %s2200_s30, 4096  ;;  %p1964_p12 = pneg %p2204_p9 }
  0x15   : > { %p1963_p11 = scmp.ne.s32.totalorder %s2200_s30, %s1962_s8  ;;  %s1967_s11 = scalar_lea.hbm %s2458_s0, 8192 }
  0x16   : > { %p1968_p1 = scmp.lt.u32.totalorder %s2200_s30, %s2458_s0  ;;  %p1969_p2 = scmp.lt.u32.totalorder %s1967_s11, %s1962_s8 }
  0x17   : > { %p1965_p13 = pnand %p1964_p12, %p1963_p11  ;;  %p1971_p4 = scmp.lt.u32.totalorder %s1962_s8, %s2200_s30 }
  0x18   : > { %p1970_p3 = por %p1969_p2, %p1968_p1 }
  0x19   : > { %p1966_p0 = pneg %p1965_p13 }
  0x1a   : > { %p1972_p5 = por %p1971_p4, %p1970_p3 }
  0x1c   : > { %p1973_p6 = pnand %p1972_p5, %p1966_p0 }
  0x1e   : > { %1976 = shalt.err (!%p1973_p6)
}
  0x1f   : > { %s1977_s21 = scalar_lea.vmem %s2208_s5, 4096  ;;  %s2108_s22 = smov [#allocation3]  }
  0x20   : > { %p1978_p8 = scmp.ne.s32.totalorder %s2208_s5, %s1977_s21  ;;  %s1982_s26 = sshll.u32 %s2108_s22, 4  ;;  %s1983_s26 = int_to_ptr.vmem [resolvable:$false] %s1982_s26 }
  0x21   : > { %s1984_s27 = scalar_lea.vmem %s1983_s26, 8192  ;;  %p1985_p10 = scmp.lt.s32.totalorder %s2208_s5, %s1983_s26 }
  0x22   : > { %p1980_p11 = pnand %p1978_p8, %p1964_p12  ;;  %p1986_p1 = scmp.lt.s32.totalorder %s1984_s27, %s1977_s21 }
  0x24   : > { %p1981_p13 = pneg %p1980_p11  ;;  %p1987_p2 = por %p1986_p1, %p1985_p10 }
  0x26   : > { %p1988_p3 = pnand %p1987_p2, %p1981_p13 }
  0x28   : > { %1991 = shalt.err (!%p1988_p3)
}
  0x29   : > { %s2109_s28 = smov 1024   ;;  %s2110_s29 = smov 512  }
  0x2a   : > { %s2111_s4 = smov 32   ;;  %p239_p0 = scmp.lt.s32.totalorder %s2106_s17, 3 }
  0x2b   : > { %1834 = dma.hbm_to_vmem [thread:$0]  (!%p2204_p9), %s2200_s30, 4096, %s2208_s5, %s192_s7, %s2109_s28, %s2110_s29, %s2111_s4  }
  0x2c   : > { %s1513_s8 = sshll.u32 %s2193_s25, 9  ;;  %s1631_s9 = sshll.u32 %s2102_s16, 13 }
  0x2d   : > { %p2466_p10 = scmp.ge.s32.totalorder %s2106_s17, 1  ;;  %s2251_s20 = scalar_lea.hbm %s2459_s1, %s1631_s9 }
  0x2e   : > { %s221_s21 = scalar_lea.vmem [#allocation6], %s1513_s8  ;;  %s218_s30 = scalar_lea.sflag [#allocation7], %s2193_s25 }
  0x2f   : > { %p2244_p4 = pnand %p2466_p10, %p239_p0  ;;  %s231_s22 = sshll.u32 %s221_s21, 4  ;;  %s2253_s22 = int_to_ptr.vmem [resolvable:$true] %s231_s22 }
  0x30   : > { %s1992_s5 = scalar_lea.hbm %s2251_s20, 8192  ;;  %s1997_s27 = scalar_lea.hbm %s2459_s1, 16384 }
  0x31   : > { %p1993_p5 = scmp.ne.s32.totalorder %s2251_s20, %s1992_s5  ;;  %p1998_p11 = scmp.lt.u32.totalorder %s2251_s20, %s2459_s1 }
  0x32   : > { %p1999_p13 = scmp.lt.u32.totalorder %s1997_s27, %s1992_s5  ;;  %p2001_p2 = scmp.lt.u32.totalorder %s1992_s5, %s2251_s20 }
  0x33   : > { %p1995_p6 = pnand %p1993_p5, %p1964_p12 }
  0x34   : > { %p2000_p1 = por %p1999_p13, %p1998_p11 }
  0x35   : > { %p1996_p8 = pneg %p1995_p6 }
  0x36   : > { %p2002_p3 = por %p2001_p2, %p2000_p1 }
  0x38   : > { %p2003_p0 = pnand %p2002_p3, %p1996_p8 }
  0x3a   : > { %2006 = shalt.err (!%p2003_p0)
}
  0x3b   : > { %s2007_s4 = scalar_lea.vmem %s2253_s22, 8192  ;;  %s2112_s8 = smov [#allocation6]  }
  0x3c   : > { %p2008_p10 = scmp.ne.s32.totalorder %s2253_s22, %s2007_s4  ;;  %s2012_s9 = sshll.u32 %s2112_s8, 4  ;;  %s2013_s9 = int_to_ptr.vmem [resolvable:$false] %s2012_s9 }
  0x3d   : > { %s2014_s11 = scalar_lea.vmem %s2013_s9, 16384  ;;  %p2015_p7 = scmp.lt.s32.totalorder %s2253_s22, %s2013_s9 }
  0x3e   : > { %p2010_p5 = pnand %p2008_p10, %p1964_p12  ;;  %p2016_p11 = scmp.lt.s32.totalorder %s2014_s11, %s2007_s4 }
  0x40   : > { %p2011_p6 = pneg %p2010_p5  ;;  %p2017_p13 = por %p2016_p11, %p2015_p7 }
  0x42   : > { %p2018_p1 = pnand %p2017_p13, %p2011_p6 }
  0x44   : > { %2021 = shalt.err (!%p2018_p1)
}
  0x45   : > { %s2113_s12 = smov 64   ;;  %s2114_s21 = smov 4  }
  0x46   : > { %1837 = dma.hbm_to_vmem [thread:$0]  (!%p2204_p9), %s2251_s20, 8192, %s2253_s22, %s218_s30, %s2113_s12, %s2113_s12, %s2114_s21  }
  0x47   : > { %243 = sbr.rel (%p2244_p4) target bundleno = 445 (0x1bd), region = 32  ;;  %s245_s5 = sand.u32 (!%p2244_p4), 1, %s2090_s13  }
  0x48   : > { %s1517_s7 = sshll.u32 (!%p2244_p4), %s245_s5, 8  ;;  %s246_s26 = scalar_lea.sflag (!%p2244_p4), [#allocation4], %s245_s5 }
  0x49   : > { %s2284_s27 = scalar_lea.vmem (!%p2244_p4), [#allocation3], %s1517_s7  ;;  %p2468_p7 = scmp.ne.s32.totalorder (!%p2244_p4), %s2464_s23, 0 }
  0x4e   : > { %2073 = dma.done.wait (%p2468_p7), %s246_s26, 4096  }
  0x4f   : > { %2075 = vsyncadd (%p2468_p7), %s246_s26, 4294963200  ;;  %s1518_s28 = sshll.u32 %s245_s5, 9  ;;  %s255_s6 = scalar_lea.sflag [#allocation7], %s245_s5 }
  0x50   : > { %s2290_s25 = scalar_lea.vmem [#allocation6], %s1518_s28 }
  0x51   : > { %2077 = dma.done.wait (%p2468_p7), %s255_s6, 8192  }
  0x52   : > { %2079 = vsyncadd (%p2468_p7), %s255_s6, 4294959104  ;;  %p1519_p9 = scmp.ne.s32.totalorder %s2098_s15, 0 }
  0x53   : > { %v2115_v0 = vmov (!%p1519_p9), 0.0  }
  0x54   : > { %301 = sbr.rel (%p1519_p9) target bundleno = 91 (0x5b), region = 44  ;;  %302 = vst [vmem:[#allocation2] sm:$0xff] (!%p1519_p9), %v2115_v0  ;;  %303 = vst [vmem:[#allocation2 + $0x8] sm:$0xff] (!%p1519_p9), %v2115_v0 }
  0x55   : > { %304 = vst [vmem:[#allocation2 + $0x10] sm:$0xff] (!%p1519_p9), %v2115_v0  ;;  %305 = vst [vmem:[#allocation2 + $0x18] sm:$0xff] (!%p1519_p9), %v2115_v0 }
  0x56   : > { %306 = vst [vmem:[#allocation2 + $0x20] sm:$0xff] (!%p1519_p9), %v2115_v0  ;;  %307 = vst [vmem:[#allocation2 + $0x28] sm:$0xff] (!%p1519_p9), %v2115_v0 }
  0x57   : > { %308 = vst [vmem:[#allocation2 + $0x30] sm:$0xff] (!%p1519_p9), %v2115_v0  ;;  %309 = vst [vmem:[#allocation2 + $0x38] sm:$0xff] (!%p1519_p9), %v2115_v0 }
  0x5b PF: > { %v1898_v1 = vld [vmem:[%s2290_s25 + $0x40] sm:$0xff]   ;;  %v1902_v5 = vld [vmem:[%s2290_s25 + $0x48] sm:$0xff]   ;;  %v1906_v9 = vld [vmem:[%s2290_s25 + $0x50] sm:$0xff]   ;;  %p1616_p12 = scmp.ne.s32.totalorder %s2098_s15, 1 }
  0x5c   : > { %v1899_v2 = vld [vmem:[%s2290_s25 + $0xc0] sm:$0xff]   ;;  %1663 = vmatprep.subr.bf16.mxu0 %v1898_v1  ;;  %v1903_v6 = vld [vmem:[%s2290_s25 + $0xc8] sm:$0xff]   ;;  %v1907_v10 = vld [vmem:[%s2290_s25 + $0xd0] sm:$0xff]  }
  0x5d   : > { %v1900_v3 = vld [vmem:[%s2290_s25] sm:$0xff]   ;;  %1703 = vmatprep.subr.bf16.mxu1 %v1899_v2  ;;  %v1904_v7 = vld [vmem:[%s2290_s25 + $0x8] sm:$0xff]   ;;  %v1908_v11 = vld [vmem:[%s2290_s25 + $0x10] sm:$0xff]  }
  0x5e   : > { %v1901_v4 = vld [vmem:[%s2290_s25 + $0x80] sm:$0xff]   ;;  %1664 = vmatpush3.bf16.msra.mxu0 %v1900_v3  ;;  %v1905_v8 = vld [vmem:[%s2290_s25 + $0x88] sm:$0xff]   ;;  %v1909_v12 = vld [vmem:[%s2290_s25 + $0x90] sm:$0xff]  }
  0x5f   : > { %1704 = vmatpush3.bf16.msra.mxu1 %v1901_v4  ;;  %1665 = vmatprep.subr.bf16.mxu0 %v1902_v5  ;;  %v1910_v13 = vld [vmem:[%s2290_s25 + $0x58] sm:$0xff]   ;;  %v1914_v17 = vld [vmem:[%s2290_s25 + $0x60] sm:$0xff]   ;;  %v1918_v21 = vld [vmem:[%s2290_s25 + $0x68] sm:$0xff]  }
  0x60   : > { %1705 = vmatprep.subr.bf16.mxu1 %v1903_v6  ;;  %v1911_v14 = vld [vmem:[%s2290_s25 + $0xd8] sm:$0xff]   ;;  %v1915_v18 = vld [vmem:[%s2290_s25 + $0xe0] sm:$0xff]   ;;  %v1919_v22 = vld [vmem:[%s2290_s25 + $0xe8] sm:$0xff]  }
  0x61   : > { %v1912_v15 = vld [vmem:[%s2290_s25 + $0x18] sm:$0xff]   ;;  %v1916_v19 = vld [vmem:[%s2290_s25 + $0x20] sm:$0xff]   ;;  %v1920_v23 = vld [vmem:[%s2290_s25 + $0x28] sm:$0xff]  }
  0x62   : > { %1666 = vmatpush3.bf16.msra.mxu0 %v1904_v7  ;;  %v1913_v16 = vld [vmem:[%s2290_s25 + $0x98] sm:$0xff]   ;;  %v1917_v20 = vld [vmem:[%s2290_s25 + $0xa0] sm:$0xff]   ;;  %v1921_v24 = vld [vmem:[%s2290_s25 + $0xa8] sm:$0xff]  }
  0x63   : > { %1706 = vmatpush3.bf16.msra.mxu1 %v1905_v8  ;;  %1667 = vmatprep.subr.bf16.mxu0 %v1906_v9  ;;  %v1922_v25 = vld [vmem:[%s2290_s25 + $0x70] sm:$0xff]   ;;  %v1926_v29 = vld [vmem:[%s2290_s25 + $0x78] sm:$0xff]   ;;  %v318_v33 = vld [vmem:[%s2284_s27] sm:$0xff] }
  0x64   : > { %1707 = vmatprep.subr.bf16.mxu1 %v1907_v10  ;;  %v1923_v26 = vld [vmem:[%s2290_s25 + $0xf0] sm:$0xff]   ;;  %v1927_v30 = vld [vmem:[%s2290_s25 + $0xf8] sm:$0xff]   ;;  %v322_v34 = vld [vmem:[%s2284_s27 + $0x20] sm:$0xff] }
  0x65   : > { %v1924_v27 = vld [vmem:[%s2290_s25 + $0x30] sm:$0xff]   ;;  %v1928_v31 = vld [vmem:[%s2290_s25 + $0x38] sm:$0xff]   ;;  %v319_v35 = vld [vmem:[%s2284_s27 + $0x8] sm:$0xff]  ;;  %v1520_v36 = vcombine.low %v318_v33, %v322_v34  ;;  %v1521_v37 = vcombine.high %v318_v33, %v322_v34 }
  0x66   : > { %1668 = vmatpush3.bf16.msra.mxu0 %v1908_v11  ;;  %v1925_v28 = vld [vmem:[%s2290_s25 + $0xb0] sm:$0xff]   ;;  %v1929_v32 = vld [vmem:[%s2290_s25 + $0xb8] sm:$0xff]   ;;  %v323_v38 = vld [vmem:[%s2284_s27 + $0x28] sm:$0xff] }
  0x67   : > { %1708 = vmatpush3.bf16.msra.mxu1 %v1909_v12  ;;  %1669 = vmatprep.subr.bf16.mxu0 %v1910_v13  ;;  %v1522_v39 = vcombine.low %v319_v35, %v323_v38  ;;  %v1523_v40 = vcombine.high %v319_v35, %v323_v38  ;;  %v1930_v41 = vld [vmem:[%s2290_s25 + $0x140] sm:$0xff]   ;;  %v1934_v45 = vld [vmem:[%s2290_s25 + $0x148] sm:$0xff]   ;;  %v1938_v57 = vld [vmem:[%s2290_s25 + $0x150] sm:$0xff]  }
  0x68   : > { %1709 = vmatprep.subr.bf16.mxu1 %v1911_v14  ;;  %1054 = vmatprep.mubr.bf16.mxu0 %v1521_v37  ;;  %v1931_v42 = vld [vmem:[%s2290_s25 + $0x1c0] sm:$0xff]   ;;  %v1935_v46 = vld [vmem:[%s2290_s25 + $0x1c8] sm:$0xff]   ;;  %v1939_v58 = vld [vmem:[%s2290_s25 + $0x1d0] sm:$0xff]  }
  0x69   : > { %1119 = vmatprep.mubr.bf16.mxu1 %v1523_v40  ;;  %v1932_v43 = vld [vmem:[%s2290_s25 + $0x100] sm:$0xff]   ;;  %v1936_v47 = vld [vmem:[%s2290_s25 + $0x108] sm:$0xff]   ;;  %v1940_v59 = vld [vmem:[%s2290_s25 + $0x110] sm:$0xff]  }
  0x6a   : > { %1670 = vmatpush3.bf16.msra.mxu0 %v1912_v15  ;;  %v1933_v44 = vld [vmem:[%s2290_s25 + $0x180] sm:$0xff]   ;;  %v1937_v48 = vld [vmem:[%s2290_s25 + $0x188] sm:$0xff]   ;;  %v1941_v60 = vld [vmem:[%s2290_s25 + $0x190] sm:$0xff]  }
  0x6b   : > { %1710 = vmatpush3.bf16.msra.mxu1 %v1913_v16  ;;  %1671 = vmatprep.subr.bf16.mxu0 %v1914_v17  ;;  %v326_v49 = vld [vmem:[%s2284_s27 + $0x40] sm:$0xff]  ;;  %v327_v52 = vld [vmem:[%s2284_s27 + $0x48] sm:$0xff]  ;;  %v1942_v61 = vld [vmem:[%s2290_s25 + $0x158] sm:$0xff]  }
  0x6c   : > { %1711 = vmatprep.subr.bf16.mxu1 %v1915_v18  ;;  %v330_v50 = vld [vmem:[%s2284_s27 + $0x60] sm:$0xff]  ;;  %v331_v53 = vld [vmem:[%s2284_s27 + $0x68] sm:$0xff]  ;;  %v1943_v62 = vld [vmem:[%s2290_s25 + $0x1d8] sm:$0xff]  }
  0x6d   : > { %v1529_v51 = vcombine.high %v326_v49, %v330_v50  ;;  %v1528_v54 = vcombine.low %v326_v49, %v330_v50  ;;  %v1531_v55 = vcombine.high %v327_v52, %v331_v53  ;;  %v1530_v56 = vcombine.low %v327_v52, %v331_v53  ;;  %v1944_v63 = vld [vmem:[%s2290_s25 + $0x118] sm:$0xff]   ;;  %v334_v1 = vld [vmem:[%s2284_s27 + $0x80] sm:$0xff]  ;;  %v335_v3 = vld [vmem:[%s2284_s27 + $0x88] sm:$0xff] }
  0x6e   : > { %1672 = vmatpush3.bf16.msra.mxu0 %v1916_v19  ;;  %v1945_v0 = vld [vmem:[%s2290_s25 + $0x198] sm:$0xff]   ;;  %v338_v2 = vld [vmem:[%s2284_s27 + $0xa0] sm:$0xff]  ;;  %v339_v4 = vld [vmem:[%s2284_s27 + $0xa8] sm:$0xff] }
  0x6f   : > { %1712 = vmatpush3.bf16.msra.mxu1 %v1917_v20  ;;  %1673 = vmatprep.subr.bf16.mxu0 %v1918_v21  ;;  %v1537_v5 = vcombine.high %v334_v1, %v338_v2  ;;  %v1539_v6 = vcombine.high %v335_v3, %v339_v4  ;;  %v1536_v7 = vcombine.low %v334_v1, %v338_v2  ;;  %v1946_v9 = vld [vmem:[%s2290_s25 + $0x160] sm:$0xff]   ;;  %v1950_v13 = vld [vmem:[%s2290_s25 + $0x168] sm:$0xff]   ;;  %v320_v33 = vld [vmem:[%s2284_s27 + $0x10] sm:$0xff] }
  0x70   : > { %1713 = vmatprep.subr.bf16.mxu1 %v1919_v22  ;;  %v1538_v8 = vcombine.low %v335_v3, %v339_v4  ;;  %v1947_v10 = vld [vmem:[%s2290_s25 + $0x1e0] sm:$0xff]   ;;  %v1951_v14 = vld [vmem:[%s2290_s25 + $0x1e8] sm:$0xff]   ;;  %v324_v34 = vld [vmem:[%s2284_s27 + $0x30] sm:$0xff] }
  0x71   : > { %v1948_v11 = vld [vmem:[%s2290_s25 + $0x120] sm:$0xff]   ;;  %v1952_v15 = vld [vmem:[%s2290_s25 + $0x128] sm:$0xff]   ;;  %v1524_v35 = vcombine.low %v320_v33, %v324_v34  ;;  %v321_v37 = vld [vmem:[%s2284_s27 + $0x18] sm:$0xff] }
  0x72   : > { %1674 = vmatpush3.bf16.msra.mxu0 %v1920_v23  ;;  %v1949_v12 = vld [vmem:[%s2290_s25 + $0x1a0] sm:$0xff]   ;;  %v1953_v16 = vld [vmem:[%s2290_s25 + $0x1a8] sm:$0xff]   ;;  %v325_v38 = vld [vmem:[%s2284_s27 + $0x38] sm:$0xff] }
  0x73   : > { %1714 = vmatpush3.bf16.msra.mxu1 %v1921_v24  ;;  %1675 = vmatprep.subr.bf16.mxu0 %v1922_v25  ;;  %v342_v17 = vld [vmem:[%s2284_s27 + $0xc0] sm:$0xff]  ;;  %v343_v19 = vld [vmem:[%s2284_s27 + $0xc8] sm:$0xff]  ;;  %v1954_v25 = vld [vmem:[%s2290_s25 + $0x170] sm:$0xff]   ;;  %v1526_v40 = vcombine.low %v321_v37, %v325_v38 }
  0x74   : > { %1715 = vmatprep.subr.bf16.mxu1 %v1923_v26  ;;  %v346_v18 = vld [vmem:[%s2284_s27 + $0xe0] sm:$0xff]  ;;  %v347_v21 = vld [vmem:[%s2284_s27 + $0xe8] sm:$0xff]  ;;  %v1955_v26 = vld [vmem:[%s2290_s25 + $0x1f0] sm:$0xff]  }
  0x75   : > { %v1545_v20 = vcombine.high %v342_v17, %v346_v18  ;;  %v1544_v22 = vcombine.low %v342_v17, %v346_v18  ;;  %v1547_v23 = vcombine.high %v343_v19, %v347_v21  ;;  %v1546_v24 = vcombine.low %v343_v19, %v347_v21  ;;  %v337_v49 = vld [vmem:[%s2284_s27 + $0x98] sm:$0xff] }
  0x76   : > { %1676 = vmatpush3.bf16.msra.mxu0 %v1924_v27  ;;  %v1956_v27 = vld [vmem:[%s2290_s25 + $0x130] sm:$0xff]   ;;  %v341_v50 = vld [vmem:[%s2284_s27 + $0xb8] sm:$0xff] }
  0x77   : > { %1716 = vmatpush3.bf16.msra.mxu1 %v1925_v28  ;;  %1677 = vmatprep.subr.bf16.mxu0 %v1926_v29  ;;  %v1957_v28 = vld [vmem:[%s2290_s25 + $0x1b0] sm:$0xff]   ;;  %v1958_v29 = vld [vmem:[%s2290_s25 + $0x178] sm:$0xff]  }
  0x78   : > { %1717 = vmatprep.subr.bf16.mxu1 %v1927_v30  ;;  %v1959_v30 = vld [vmem:[%s2290_s25 + $0x1f8] sm:$0xff]  }
  0x7a   : > { %1678 = vmatpush3.bf16.msra.mxu0 %v1928_v31  ;;  %v1960_v31 = vld [vmem:[%s2290_s25 + $0x138] sm:$0xff]  }
  0x7b   : > { %1718 = vmatpush3.bf16.msra.mxu1 %v1929_v32  ;;  %1743 = vmatprep.subr.bf16.mxu0 %v1930_v41  ;;  %v1961_v32 = vld [vmem:[%s2290_s25 + $0x1b8] sm:$0xff]   ;;  %v1527_v41 = vcombine.high %v321_v37, %v325_v38 }
  0x7c   : > { %1783 = vmatprep.subr.bf16.mxu1 %v1931_v42  ;;  %v332_v42 = vld [vmem:[%s2284_s27 + $0x70] sm:$0xff] }
  0x7d   : > { %1055 = vmatmul.mubr.bf16.vlgmr.msra.gmra.mrb[0].mxu0 %v1520_v36  ;;  %v1525_v36 = vcombine.high %v320_v33, %v324_v34 }
  0x7e   : > { %1120 = vmatmul.mubr.bf16.vlgmr.msra.gmra.mrb[0].mxu1 %v1522_v39  ;;  %1744 = vmatpush3.bf16.msra.mxu0 %v1932_v43  ;;  %v328_v39 = vld [vmem:[%s2284_s27 + $0x50] sm:$0xff]  ;;  %v329_v43 = vld [vmem:[%s2284_s27 + $0x58] sm:$0xff] }
  0x7f   : > { %1784 = vmatpush3.bf16.msra.mxu1 %v1933_v44  ;;  %1745 = vmatprep.subr.bf16.mxu0 %v1934_v45  ;;  %v333_v44 = vld [vmem:[%s2284_s27 + $0x78] sm:$0xff]  ;;  %v1533_v45 = vcombine.high %v328_v39, %v332_v42 }
  0x80   : > { %1785 = vmatprep.subr.bf16.mxu1 %v1935_v46  ;;  %1062 = vmatprep.mubr.bf16.mxu0 %v1529_v51  ;;  %v1535_v46 = vcombine.high %v329_v43, %v333_v44  ;;  %v1532_v51 = vcombine.low %v328_v39, %v332_v42  ;;  %v1534_v52 = vcombine.low %v329_v43, %v333_v44 }
  0x81   : > { %1127 = vmatprep.mubr.bf16.mxu1 %v1531_v55  ;;  %v344_v55 = vld [vmem:[%s2284_s27 + $0xd0] sm:$0xff] }
  0x82   : > { %1746 = vmatpush3.bf16.msra.mxu0 %v1936_v47  ;;  %v336_v47 = vld [vmem:[%s2284_s27 + $0x90] sm:$0xff] }
  0x83   : > { %1786 = vmatpush3.bf16.msra.mxu1 %v1937_v48  ;;  %1747 = vmatprep.subr.bf16.mxu0 %v1938_v57  ;;  %v340_v48 = vld [vmem:[%s2284_s27 + $0xb0] sm:$0xff]  ;;  %v345_v57 = vld [vmem:[%s2284_s27 + $0xd8] sm:$0xff] }
  0x84   : > { %1787 = vmatprep.subr.bf16.mxu1 %v1939_v58  ;;  %v1541_v53 = vcombine.high %v336_v47, %v340_v48  ;;  %v349_v58 = vld [vmem:[%s2284_s27 + $0xf8] sm:$0xff] }
  0x85   : > { %1063 = vmatmul.mubr.bf16.gmra.mrb[4].mxu0 %v1528_v54  ;;  %v1543_v54 = vcombine.high %v337_v49, %v341_v50 }
  0x86   : > { %1128 = vmatmul.mubr.bf16.gmra.mrb[4].mxu1 %v1530_v56  ;;  %1748 = vmatpush3.bf16.msra.mxu0 %v1940_v59  ;;  %v348_v56 = vld [vmem:[%s2284_s27 + $0xf0] sm:$0xff]  ;;  %v1540_v59 = vcombine.low %v336_v47, %v340_v48 }
  0x87   : > { %1788 = vmatpush3.bf16.msra.mxu1 %v1941_v60  ;;  %1749 = vmatprep.subr.bf16.mxu0 %v1942_v61  ;;  %v1542_v60 = vcombine.low %v337_v49, %v341_v50  ;;  %v1549_v61 = vcombine.high %v344_v55, %v348_v56 }
  0x88   : > { %1789 = vmatprep.subr.bf16.mxu1 %v1943_v62  ;;  %1070 = vmatprep.mubr.bf16.mxu0 %v1537_v5  ;;  %v1551_v62 = vcombine.high %v345_v57, %v349_v58 }
  0x89   : > { %1135 = vmatprep.mubr.bf16.mxu1 %v1539_v6 }
  0x8a   : > { %1750 = vmatpush3.bf16.msra.mxu0 %v1944_v63  ;;  %v1548_v63 = vcombine.low %v344_v55, %v348_v56 }
  0x8b   : > { %1790 = vmatpush3.bf16.msra.mxu1 %v1945_v0  ;;  %1751 = vmatprep.subr.bf16.mxu0 %v1946_v9  ;;  %v1550_v0 = vcombine.low %v345_v57, %v349_v58 }
  0x8c   : > { %1791 = vmatprep.subr.bf16.mxu1 %v1947_v10 }
  0x8d   : > { %1071 = vmatmul.mubr.bf16.gmra.mrb[8].mxu0 %v1536_v7 }
  0x8e   : > { %1136 = vmatmul.mubr.bf16.gmra.mrb[8].mxu1 %v1538_v8  ;;  %1752 = vmatpush3.bf16.msra.mxu0 %v1948_v11 }
  0x8f   : > { %1792 = vmatpush3.bf16.msra.mxu1 %v1949_v12  ;;  %1753 = vmatprep.subr.bf16.mxu0 %v1950_v13 }
  0x90   : > { %1793 = vmatprep.subr.bf16.mxu1 %v1951_v14  ;;  %1078 = vmatprep.mubr.bf16.mxu0 %v1545_v20 }
  0x91   : > { %1143 = vmatprep.mubr.bf16.mxu1 %v1547_v23 }
  0x92   : > { %1754 = vmatpush3.bf16.msra.mxu0 %v1952_v15 }
  0x93   : > { %1794 = vmatpush3.bf16.msra.mxu1 %v1953_v16  ;;  %1755 = vmatprep.subr.bf16.mxu0 %v1954_v25 }
  0x94   : > { %1795 = vmatprep.subr.bf16.mxu1 %v1955_v26 }
  0x95   : > { %1079 = vmatmul.mubr.bf16.gmra.mrb[12].mxu0 %v1544_v22 }
  0x96   : > { %1144 = vmatmul.mubr.bf16.gmra.mrb[12].mxu1 %v1546_v24  ;;  %1756 = vmatpush3.bf16.msra.mxu0 %v1956_v27 }
  0x97   : > { %1796 = vmatpush3.bf16.msra.mxu1 %v1957_v28  ;;  %1757 = vmatprep.subr.bf16.mxu0 %v1958_v29 }
  0x98   : > { %1797 = vmatprep.subr.bf16.mxu1 %v1959_v30  ;;  %1184 = vmatprep.mubr.bf16.mxu0 %v1525_v36 }
  0x99   : > { %1249 = vmatprep.mubr.bf16.mxu1 %v1527_v41 }
  0x9a   : > { %1758 = vmatpush3.bf16.msra.mxu0 %v1960_v31 }
  0x9b   : > { %1798 = vmatpush3.bf16.msra.mxu1 %v1961_v32 }
  0x9d   : > { %1185 = vmatmul.mubr.bf16.vlgmr.msra.gmra.mrb[16].mxu0 %v1524_v35 }
  0x9e   : > { %1250 = vmatmul.mubr.bf16.vlgmr.msra.gmra.mrb[16].mxu1 %v1526_v40  ;;  %1192 = vmatprep.mubr.bf16.mxu0 %v1533_v45 }
  0x9f   : > { %1257 = vmatprep.mubr.bf16.mxu1 %v1535_v46 }
  0xa5   : > { %1193 = vmatmul.mubr.bf16.gmra.mrb[20].mxu0 %v1532_v51 }
  0xa6   : > { %1258 = vmatmul.mubr.bf16.gmra.mrb[20].mxu1 %v1534_v52  ;;  %1200 = vmatprep.mubr.bf16.mxu0 %v1541_v53 }
  0xa7   : > { %1265 = vmatprep.mubr.bf16.mxu1 %v1543_v54 }
  0xad   : > { %1201 = vmatmul.mubr.bf16.gmra.mrb[24].mxu0 %v1540_v59 }
  0xae   : > { %1266 = vmatmul.mubr.bf16.gmra.mrb[24].mxu1 %v1542_v60  ;;  %1208 = vmatprep.mubr.bf16.mxu0 %v1549_v61 }
  0xaf   : > { %1273 = vmatprep.mubr.bf16.mxu1 %v1551_v62 }
  0xb5   : > { %1209 = vmatmul.mubr.bf16.gmra.mrb[28].mxu0 %v1548_v63 }
  0xb6   : > { %1274 = vmatmul.mubr.bf16.gmra.mrb[28].mxu1 %v1550_v0 }
 0x150   : > { %v1679_v1 = vpop.f32.mrb[0].mxu0 }
 0x151   : > { %v1719_v2 = vpop.f32.mrb[0].mxu1  ;;  %v1680_v3 = vpop.f32.mrb[1].mxu0 }
 0x152   : > { %v1681_v4 = vadd.f32 %v1680_v3, %v1679_v1  ;;  %v1720_v5 = vpop.f32.mrb[1].mxu1  ;;  %v1682_v6 = vpop.f32.mrb[2].mxu0 }
 0x153   : > { %v1721_v7 = vadd.f32 %v1720_v5, %v1719_v2  ;;  %v1722_v8 = vpop.f32.mrb[2].mxu1  ;;  %v1683_v9 = vpop.f32.mrb[3].mxu0  ;;  %v310_v5 = vld [vmem:[#allocation2] sm:$0xff] }
 0x154   : > { %v1684_v10 = vadd.f32 %v1683_v9, %v1682_v6  ;;  %v1723_v11 = vpop.f32.mrb[3].mxu1  ;;  %v311_v9 = vld [vmem:[#allocation2 + $0x8] sm:$0xff] }
 0x155   : > { %v1122_v12 = vadd.f32 %v1721_v7, %v1681_v4  ;;  %v1724_v13 = vadd.f32 %v1723_v11, %v1722_v8 }
 0x157   : > { %v1125_v14 = vadd.f32 %v1724_v13, %v1684_v10 }
 0x158   : > { %v1685_v15 = vpop.f32.mrb[4].mxu0 }
 0x159   : > { %v1725_v16 = vpop.f32.mrb[4].mxu1  ;;  %v1686_v17 = vpop.f32.mrb[5].mxu0 }
 0x15a   : > { %v1687_v18 = vadd.f32 %v1686_v17, %v1685_v15  ;;  %v1726_v19 = vpop.f32.mrb[5].mxu1  ;;  %v1688_v20 = vpop.f32.mrb[6].mxu0 }
 0x15b   : > { %v1727_v21 = vadd.f32 %v1726_v19, %v1725_v16  ;;  %v1728_v22 = vpop.f32.mrb[6].mxu1  ;;  %v1689_v23 = vpop.f32.mrb[7].mxu0 }
 0x15c   : > { %v1690_v24 = vadd.f32 %v1689_v23, %v1688_v20  ;;  %v1729_v25 = vpop.f32.mrb[7].mxu1 }
 0x15d   : > { %v1130_v26 = vadd.f32 %v1727_v21, %v1687_v18  ;;  %v1730_v27 = vadd.f32 %v1729_v25, %v1728_v22 }
 0x15f   : > { %v2393_v28 = vadd.f32 %v1730_v27, %v1690_v24  ;;  %v312_v27 = vld [vmem:[#allocation2 + $0x10] sm:$0xff] }
 0x160   : > { %v1691_v29 = vpop.f32.mrb[8].mxu0 }
 0x161   : > { %v1731_v30 = vpop.f32.mrb[8].mxu1  ;;  %v1692_v31 = vpop.f32.mrb[9].mxu0 }
 0x162   : > { %v1732_v32 = vpop.f32.mrb[9].mxu1  ;;  %v1693_v33 = vadd.f32 %v1692_v31, %v1691_v29  ;;  %v1694_v35 = vpop.f32.mrb[10].mxu0  ;;  %v313_v31 = vld [vmem:[#allocation2 + $0x18] sm:$0xff] }
 0x163   : > { %v1733_v34 = vadd.f32 %v1732_v32, %v1731_v30  ;;  %v1734_v36 = vpop.f32.mrb[10].mxu1  ;;  %v1695_v37 = vpop.f32.mrb[11].mxu0 }
 0x164   : > { %v1735_v38 = vpop.f32.mrb[11].mxu1  ;;  %v1696_v40 = vadd.f32 %v1695_v37, %v1694_v35 }
 0x165   : > { %v2395_v39 = vadd.f32 %v1733_v34, %v1693_v33  ;;  %v1736_v41 = vadd.f32 %v1735_v38, %v1734_v36 }
 0x167   : > { %v2397_v42 = vadd.f32 %v1736_v41, %v1696_v40 }
 0x168   : > { %v1697_v43 = vpop.f32.mrb[12].mxu0 }
 0x169   : > { %v1737_v44 = vpop.f32.mrb[12].mxu1  ;;  %v1698_v45 = vpop.f32.mrb[13].mxu0 }
 0x16a   : > { %v1699_v46 = vadd.f32 %v1698_v45, %v1697_v43  ;;  %v1738_v47 = vpop.f32.mrb[13].mxu1  ;;  %v1700_v48 = vpop.f32.mrb[14].mxu0 }
 0x16b   : > { %v1739_v49 = vadd.f32 %v1738_v47, %v1737_v44  ;;  %v1740_v50 = vpop.f32.mrb[14].mxu1  ;;  %v1701_v51 = vpop.f32.mrb[15].mxu0 }
 0x16c   : > { %v1702_v52 = vadd.f32 %v1701_v51, %v1700_v48  ;;  %v1741_v53 = vpop.f32.mrb[15].mxu1  ;;  %v315_v51 = vld [vmem:[#allocation2 + $0x28] sm:$0xff] }
 0x16d   : > { %v2399_v54 = vadd.f32 %v1739_v49, %v1699_v46  ;;  %v1742_v55 = vadd.f32 %v1741_v53, %v1740_v50 }
 0x16f   : > { %v2401_v56 = vadd.f32 %v1742_v55, %v1702_v52 }
 0x170   : > { %v1759_v57 = vpop.f32.mrb[16].mxu0 }
 0x171   : > { %v1799_v58 = vpop.f32.mrb[16].mxu1  ;;  %v1760_v59 = vpop.f32.mrb[17].mxu0 }
 0x172   : > { %v1761_v60 = vadd.f32 %v1760_v59, %v1759_v57  ;;  %v1800_v61 = vpop.f32.mrb[17].mxu1  ;;  %v1762_v62 = vpop.f32.mrb[18].mxu0 }
 0x173   : > { %v1801_v63 = vadd.f32 %v1800_v61, %v1799_v58  ;;  %v1802_v0 = vpop.f32.mrb[18].mxu1  ;;  %v1763_v1 = vpop.f32.mrb[19].mxu0 }
 0x174   : > { %v1187_v2 = vadd.f32 %v1761_v60, %v1122_v12  ;;  %v1764_v3 = vadd.f32 %v1763_v1, %v1762_v62  ;;  %v1803_v4 = vpop.f32.mrb[19].mxu1 }
 0x175   : > { %v1804_v6 = vadd.f32 %v1803_v4, %v1802_v0 }
 0x176   : > { %v1252_v7 = vadd.f32 %v1801_v63, %v1187_v2  ;;  %v1190_v8 = vadd.f32 %v1764_v3, %v1125_v14 }
 0x178   : > { %v1282_v10 = vadd.f32 %v1252_v7, %v310_v5  ;;  %v1255_v11 = vadd.f32 %v1804_v6, %v1190_v8  ;;  %v1765_v13 = vpop.f32.mrb[20].mxu0  ;;  %v317_v7 = vld [vmem:[#allocation2 + $0x38] sm:$0xff] }
 0x179   : > { %v1805_v15 = vpop.f32.mrb[20].mxu1  ;;  %v1766_v16 = vpop.f32.mrb[21].mxu0 }
 0x17a   : > { %1290 = vst [vmem:[#allocation2] sm:$0xff] %v1282_v10  ;;  %v1283_v17 = vadd.f32 %v1255_v11, %v311_v9  ;;  %v1767_v18 = vadd.f32 %v1766_v16, %v1765_v13  ;;  %v1806_v19 = vpop.f32.mrb[21].mxu1  ;;  %v1768_v20 = vpop.f32.mrb[22].mxu0 }
 0x17b   : > { %v1807_v21 = vadd.f32 %v1806_v19, %v1805_v15  ;;  %v1808_v22 = vpop.f32.mrb[22].mxu1  ;;  %v1769_v12 = vpop.f32.mrb[23].mxu0 }
 0x17c   : > { %1291 = vst [vmem:[#allocation2 + $0x8] sm:$0xff] %v1283_v17  ;;  %v1195_v23 = vadd.f32 %v1767_v18, %v1130_v26  ;;  %v1770_v24 = vadd.f32 %v1769_v12, %v1768_v20  ;;  %v1809_v25 = vpop.f32.mrb[23].mxu1 }
 0x17d   : > { %v1810_v14 = vadd.f32 %v1809_v25, %v1808_v22 }
 0x17e   : > { %v1260_v29 = vadd.f32 %v1807_v21, %v1195_v23  ;;  %v1198_v30 = vadd.f32 %v1770_v24, %v2393_v28  ;;  %v314_v28 = vld [vmem:[#allocation2 + $0x20] sm:$0xff] }
 0x180   : > { %v1284_v32 = vadd.f32 %v1260_v29, %v312_v27  ;;  %v1263_v33 = vadd.f32 %v1810_v14, %v1198_v30  ;;  %v1771_v34 = vpop.f32.mrb[24].mxu0 }
 0x181   : > { %v1811_v35 = vpop.f32.mrb[24].mxu1  ;;  %v1772_v36 = vpop.f32.mrb[25].mxu0  ;;  %v1302_v11 = vld [vmem:[#allocation2] sm:$0xff] (!%p1616_p12) }
 0x182   : > { %1292 = vst [vmem:[#allocation2 + $0x10] sm:$0xff] %v1284_v32  ;;  %v1285_v37 = vadd.f32 %v1263_v33, %v313_v31  ;;  %v1773_v38 = vadd.f32 %v1772_v36, %v1771_v34  ;;  %v1812_v40 = vpop.f32.mrb[25].mxu1  ;;  %v1774_v41 = vpop.f32.mrb[26].mxu0 }
 0x183   : > { %v1813_v43 = vadd.f32 %v1812_v40, %v1811_v35  ;;  %v1814_v26 = vpop.f32.mrb[26].mxu1  ;;  %v1775_v44 = vpop.f32.mrb[27].mxu0  ;;  %v1303_v13 = vld [vmem:[#allocation2 + $0x8] sm:$0xff] (!%p1616_p12) }
 0x184   : > { %1293 = vst [vmem:[#allocation2 + $0x18] sm:$0xff] %v1285_v37  ;;  %v1203_v45 = vadd.f32 %v1773_v38, %v2395_v39  ;;  %v1776_v46 = vadd.f32 %v1775_v44, %v1774_v41  ;;  %v1815_v47 = vpop.f32.mrb[27].mxu1 }
 0x185   : > { %v1816_v48 = vadd.f32 %v1815_v47, %v1814_v26 }
 0x186   : > { %v1268_v49 = vadd.f32 %v1813_v43, %v1203_v45  ;;  %v1206_v50 = vadd.f32 %v1776_v46, %v2397_v42  ;;  %v316_v42 = vld [vmem:[#allocation2 + $0x30] sm:$0xff] }
 0x188   : > { %v1286_v52 = vadd.f32 %v1268_v49, %v314_v28  ;;  %v1271_v53 = vadd.f32 %v1816_v48, %v1206_v50  ;;  %v1777_v55 = vpop.f32.mrb[28].mxu0 }
 0x189   : > { %v1817_v57 = vpop.f32.mrb[28].mxu1  ;;  %v1778_v58 = vpop.f32.mrb[29].mxu0  ;;  %v1304_v17 = vld [vmem:[#allocation2 + $0x10] sm:$0xff] (!%p1616_p12) }
 0x18a   : > { %1294 = vst [vmem:[#allocation2 + $0x20] sm:$0xff] %v1286_v52  ;;  %v1287_v59 = vadd.f32 %v1271_v53, %v315_v51  ;;  %v1779_v60 = vadd.f32 %v1778_v58, %v1777_v55  ;;  %v1818_v61 = vpop.f32.mrb[29].mxu1  ;;  %v1780_v62 = vpop.f32.mrb[30].mxu0 }
 0x18b   : > { %v1819_v63 = vadd.f32 %v1818_v61, %v1817_v57  ;;  %v1820_v39 = vpop.f32.mrb[30].mxu1  ;;  %v1781_v0 = vpop.f32.mrb[31].mxu0  ;;  %v1305_v18 = vld [vmem:[#allocation2 + $0x18] sm:$0xff] (!%p1616_p12) }
 0x18c   : > { %1295 = vst [vmem:[#allocation2 + $0x28] sm:$0xff] %v1287_v59  ;;  %v1211_v1 = vadd.f32 %v1779_v60, %v2399_v54  ;;  %v1782_v2 = vadd.f32 %v1781_v0, %v1780_v62  ;;  %v1821_v3 = vpop.f32.mrb[31].mxu1  ;;  %v1617_v54 = vld [vmem:[%s2460_s2] ss:$0 sm:$0xff] (!%p1616_p12) }
 0x18d   : > { %v1822_v4 = vadd.f32 %v1821_v3, %v1820_v39  ;;  %v1317_v15 = vadd.f32 (!%p1616_p12), %v1617_v54, %v1302_v11  ;;  %v1318_v16 = vadd.f32 (!%p1616_p12), %v1617_v54, %v1303_v13  ;;  %v1319_v19 = vadd.f32 (!%p1616_p12), %v1617_v54, %v1304_v17 }
 0x18e   : > { %v1276_v5 = vadd.f32 %v1819_v63, %v1211_v1  ;;  %v1214_v6 = vadd.f32 %v1782_v2, %v2401_v56  ;;  %1301 = sbr.rel (%p1616_p12) target bundleno = 419 (0x1a3), region = 48  ;;  %v1320_v20 = vadd.f32 (!%p1616_p12), %v1617_v54, %v1305_v18 }
 0x18f   : > { %v1325_v24 = vmax.f32 (!%p1616_p12), %v1317_v15, 0.0  ;;  %v1326_v25 = vmax.f32 (!%p1616_p12), %v1318_v16, 0.0  ;;  %v1327_v29 = vmax.f32 (!%p1616_p12), %v1319_v19, 0.0 }
 0x190   : > { %v1288_v8 = vadd.f32 %v1276_v5, %v316_v42  ;;  %v1279_v9 = vadd.f32 %v1822_v4, %v1214_v6  ;;  %v1328_v30 = vmax.f32 (!%p1616_p12), %v1320_v20, 0.0 }
 0x191   : > { %v1306_v56 = vld [vmem:[#allocation2 + $0x20] sm:$0xff] (!%p1616_p12)  ;;  %v1643_v33 = vpack.c.bf16 (!%p1616_p12), %v1326_v25, %v1325_v24 }
 0x192   : > { %1296 = vst [vmem:[#allocation2 + $0x30] sm:$0xff] %v1288_v8  ;;  %v1289_v10 = vadd.f32 %v1279_v9, %v317_v7  ;;  %v1321_v22 = vadd.f32 (!%p1616_p12), %v1617_v54, %v1306_v56  ;;  %v1648_v36 = vpack.c.bf16 (!%p1616_p12), %v1328_v30, %v1327_v29 }
 0x193   : > { %v1307_v21 = vld [vmem:[#allocation2 + $0x28] sm:$0xff] (!%p1616_p12)  ;;  %1644 = vst [vmem:[#allocation8] sm:$0xff] (!%p1616_p12), %v1643_v33  }
 0x194   : > { %1297 = vst [vmem:[#allocation2 + $0x38] sm:$0xff] %v1289_v10  ;;  %v1322_v27 = vadd.f32 (!%p1616_p12), %v1617_v54, %v1307_v21  ;;  %v1329_v31 = vmax.f32 (!%p1616_p12), %v1321_v22, 0.0  ;;  %1660 = vst [vmem:[#allocation8 + $0x8] sm:$0xff] (!%p1616_p12), %v1648_v36  }
 0x196   : > { %v1330_v34 = vmax.f32 %v1322_v27, 0.0 }
 0x198   : > { %v1653_v38 = vpack.c.bf16 %v1330_v34, %v1329_v31 }
 0x199   : > { %v1308_v12 = vld [vmem:[#allocation2 + $0x30] sm:$0xff] }
 0x19a   : > { %v1323_v14 = vadd.f32 %v1617_v54, %v1308_v12  ;;  %1661 = vst [vmem:[#allocation8 + $0x10] sm:$0xff] %v1653_v38  }
 0x19b   : > { %v1309_v23 = vld [vmem:[#allocation2 + $0x38] sm:$0xff] }
 0x19c   : > { %v1324_v32 = vadd.f32 %v1617_v54, %v1309_v23  ;;  %v1331_v35 = vmax.f32 %v1323_v14, 0.0 }
 0x19e   : > { %v1332_v37 = vmax.f32 %v1324_v32, 0.0 }
 0x1a0   : > { %v1658_v40 = vpack.c.bf16 %v1332_v37, %v1331_v35 }
 0x1a2   : > { %1662 = vst [vmem:[#allocation8 + $0x18] sm:$0xff] %v1658_v40  }
 0x1a3 PF: > { %p2414_p4 = scmp.eq.s32.totalorder %s1506_s18, 1  ;;  %s2116_s20 = smov [#allocation8]  }
 0x1a4   : > { %s1385_s22 = sshll.u32 %s2116_s20, 4  ;;  %s1386_s22 = int_to_ptr.vmem [resolvable:$true] %s1385_s22 }
 0x1a5   : > { %s2022_s30 = scalar_lea.vmem %s1386_s22, 512  ;;  %p2029_p0 = scmp.lt.s32.totalorder %s1386_s22, %s1386_s22 }
 0x1a6   : > { %p2023_p8 = scmp.ne.s32.totalorder %s1386_s22, %s2022_s30  ;;  %p2030_p10 = scmp.lt.s32.totalorder %s2022_s30, %s2022_s30 }
 0x1a8   : > { %p2024_p2 = pnand %p2023_p8, %p2414_p4  ;;  %p2031_p5 = por %p2030_p10, %p2029_p0 }
 0x1aa   : > { %p2025_p3 = pneg %p2024_p2 }
 0x1ac   : > { %p2032_p6 = pnand %p2031_p5, %p2025_p3 }
 0x1ae   : > { %2035 = shalt.err (!%p2032_p6)
}
 0x1af   : > { %s2036_s18 = scalar_lea.hbm %s2461_s3, 512 }
 0x1b0   : > { %p2037_p11 = scmp.ne.s32.totalorder %s2461_s3, %s2036_s18  ;;  %p2042_p7 = scmp.lt.u32.totalorder %s2036_s18, %s2461_s3 }
 0x1b2   : > { %p2038_p13 = pnand %p2037_p11, %p2414_p4 }
 0x1b4   : > { %p2039_p1 = pneg %p2038_p13 }
 0x1b6   : > { %p2044_p9 = pnand %p2042_p7, %p2039_p1 }
 0x1b8   : > { %2047 = shalt.err (!%p2044_p9)
}
 0x1b9   : > { %s2117_s21 = smov 64   ;;  %s2118_s5 = smov 4  }
 0x1ba   : > { %1828 = dma.vmem_to_hbm [thread:$0]  (%p2414_p4), %s1386_s22, 512, %s2461_s3, [#allocation5], %s2117_s21, %s2117_s21, %s2118_s5  }
 0x1bb   : > { %2081 = dma.done.wait (%p2414_p4), [#allocation5], 512  }
 0x1bc   : > { %2083 = vsyncadd (%p2414_p4), [#allocation5], 4294966784 }
 0x1bd PF: > { %s20_s17 = sadd.s32 1, %s2106_s17   ;;  %s2470_s12 = smov %s2090_s13 }
 0x1be   : > { %p17_p12 = scmp.ge.s32.totalorder %s20_s17, 4   ;;  %s2471_s13 = smov %s2094_s14 }
 0x1bf   : > { %s2472_s14 = smov %s2190_s24  ;;  %s2473_s15 = smov %s2102_s16 }
 0x1c0   : > { %s2474_s16 = smov %s2476_s19  ;;  %19 = sbr.rel (!%p17_p12) target bundleno = 7 (0x7), region = 94 }
 0x1c7   :  { %1401 = vsyncpa [#allocation4], 1 }
 0x1c8   :  { %1403 = vsyncpa [#allocation4 + $0x1], 1 }
 0x1c9   :  { %1404 = vsyncpa [#allocation7], 1 }
 0x1ca   :  { %1406 = vsyncpa [#allocation7 + $0x1], 1 }
 0x1cb   :  { %1407 = vsyncpa [#allocation5], 1 }
 0x1cc   :  { %1409 = vsyncpa [#allocation5 + $0x1], 1 }

</bundles_post_ra>
